<compile_context>
chip_gen: v5e
topology: v5e:2x2
jax: 0.10.0
libtpu: 0.0.40
codegen_flags: <defaults>
</compile_context>

<pallas_src>
import functools

import jax
import jax.numpy as jnp
from jax import lax
from jax.experimental import pallas as pl
from jax.experimental.pallas import tpu as pltpu

_EPS = 1e-12            # F.normalize default eps (applied to the L2 norm)
_EPS_SQ = _EPS * _EPS   # equivalent floor on the squared sum (sqrt is monotone)

_VMEM_LIMIT_BYTES = 48 * 1024 * 1024       # < v7x's 64 MiB physical; raises
                                           # v5e's 16 MiB / v6e-v7x 32 MiB default
_TARGET_BLOCK_BYTES = 4 * 1024 * 1024      # per-direction HBM bytes per grid step
_MAX_F32_BLOCK_BYTES = 8 * 1024 * 1024     # cap on the in-kernel f32 upcast temp


def _simple_rms_norm_kernel(x_ref, o_ref, *, scale):
    # x_ref / o_ref: (row_tile, dim) tiles in VMEM; normalize along lanes.
    x = x_ref[...].astype(jnp.float32)
    sq_sum = jnp.sum(x * x, axis=-1, keepdims=True)
    # out = x * scale / max(sqrt(sq_sum), eps)
    #     = x * scale * rsqrt(max(sq_sum, eps**2))
    # rsqrt lowers to the EUP transcendental slot (idle in this mem-bound kernel).
    inv = scale * lax.rsqrt(jnp.maximum(sq_sum, _EPS_SQ))
    o_ref[...] = (x * inv).astype(o_ref.dtype)


def _round_up(n, m):
    return ((n + m - 1) // m) * m


def _pick_row_tile(
    n_rows,
    dim,
    dtype,
    *,
    target_block_bytes=_TARGET_BLOCK_BYTES,
    max_f32_block_bytes=_MAX_F32_BLOCK_BYTES,
):
    """Row tile sized by actual I/O bytes per grid step.

    - Aligned to the packed-sublane count of the I/O dtype (8 f32, 16 bf16,
      32 int8/fp8).
    - Targets ~target_block_bytes of *input dtype* bytes per direction per
      step (amortizes the ~0.35 us per-step pipeline overhead).
    - Caps the f32 upcast temp at max_f32_block_bytes so the double-buffered
      VMEM footprint stays bounded regardless of dtype.
    - Capped at ~half the row count so the grid has >= 2 steps when possible
      (lets the "parallel" axis shard across v7x's 2 TensorCores).
    """
    itemsize = jnp.dtype(dtype).itemsize
    packing = max(1, 4 // itemsize)   # elems per 32-bit sublane word
    sublane = 8 * packing             # 8 (f32), 16 (bf16/f16), 32 (int8/fp8)

    # Size by actual HBM bytes moved per direction per step.
    tile = target_block_bytes // (dim * itemsize)
    # Keep the in-kernel f32 temp (row_tile * dim * 4 bytes) bounded.
    tile = min(tile, max_f32_block_bytes // (dim * 4))
    tile = max(sublane, (tile // sublane) * sublane)

    # Never tile past the sublane-rounded row count.
    rows_rounded = _round_up(n_rows, sublane)
    tile = min(tile, rows_rounded)

    # Guarantee >= 2 grid steps whenever the row count allows it, so both
    # v7x TensorCores get work (grid=1 idles half the chip).
    if n_rows > sublane:
        half_rows = _round_up((n_rows + 1) // 2, sublane)
        tile = min(tile, half_rows)

    return tile


def simple_rms_norm(x: jax.Array, *, row_tile: int | None = None) -> jax.Array:
    """SimpleRMSNorm forward: F.normalize(x, dim=-1) * dim**(-0.5)."""
    orig_shape = x.shape
    dim = orig_shape[-1]
    scale = float(dim) ** (-0.5)
    itemsize = jnp.dtype(x.dtype).itemsize

    # Flatten all leading dims into rows; normalized axis stays last (lanes).
    x2d = x.reshape(-1, dim)
    n_rows = x2d.shape[0]

    if row_tile is None:
        row_tile = _pick_row_tile(n_rows, dim, x.dtype)

    grid = pl.cdiv(n_rows, row_tile)  # partial last block: OOB rows masked on store

    kernel = functools.partial(_simple_rms_norm_kernel, scale=scale)

    # Advisory cost estimate: purely mem-bound, 1 transcendental (rsqrt) per row.
    cost = pl.CostEstimate(
        flops=3 * n_rows * dim,
        transcendentals=n_rows,
        bytes_accessed=2 * n_rows * dim * itemsize,
    )

    out2d = pl.pallas_call(
        kernel,
        out_shape=jax.ShapeDtypeStruct((n_rows, dim), x.dtype),
        grid_spec=pltpu.PrefetchScalarGridSpec(
            num_scalar_prefetch=0,
            grid=(grid,),
            in_specs=[pl.BlockSpec((row_tile, dim), lambda i: (i, 0))],
            out_specs=pl.BlockSpec((row_tile, dim), lambda i: (i, 0)),
        ),
        compiler_params=pltpu.CompilerParams(
            # Row axis is independent -> shards across v7x's 2 TensorCores.
            dimension_semantics=("parallel",),
            # Explicit scoped-VMEM budget: fits every chip (v5e default is only
            # 16 MiB; v7x physical is 64 MiB) and comfortably covers the
            # double-buffered in/out blocks (2x4 + 2x4 MiB) plus <=8 MiB f32 temps.
            vmem_limit_bytes=_VMEM_LIMIT_BYTES,
        ),
        cost_estimate=cost,
    )(x2d)

    return out2d.reshape(orig_shape)


def _reference(x):
    x32 = x.astype(jnp.float32)
    norm = jnp.maximum(
        jnp.sqrt(jnp.sum(x32 * x32, axis=-1, keepdims=True)), _EPS
    )
    scale = float(x.shape[-1]) ** (-0.5)
    return (x32 / norm * scale).astype(x.dtype)


if __name__ == "__main__":
    key = jax.random.PRNGKey(0)
    k0, k1, k2 = jax.random.split(key, 3)

    # Shapes consistent with the module's usage: (batch, seq, dim)
    x = jax.random.normal(k0, (2, 8, 256), dtype=jnp.float32)
    out = jax.block_until_ready(simple_rms_norm(x))
    ref = _reference(x)
    assert out.shape == x.shape
    assert jnp.allclose(out, ref, atol=1e-5, rtol=1e-5)

    # Row count not a multiple of the tile -> exercises the masked partial block
    # and the grid >= 2 cap.
    y = jax.random.normal(k1, (3, 5, 256), dtype=jnp.float32)
    out_y = jax.block_until_ready(simple_rms_norm(y))
    ref_y = _reference(y)
    assert out_y.shape == y.shape
    assert jnp.allclose(out_y, ref_y, atol=1e-5, rtol=1e-5)

    # bf16 path: exercises itemsize-based block sizing + f32 accumulation.
    z = jax.random.normal(k2, (2, 9, 256), dtype=jnp.bfloat16)
    out_z = jax.block_until_ready(simple_rms_norm(z))
    ref_z = _reference(z)
    assert out_z.shape == z.shape
    assert jnp.allclose(
        out_z.astype(jnp.float32), ref_z.astype(jnp.float32), atol=2e-2, rtol=2e-2
    )

    print("KERNEL_OK")
</pallas_src>

<mosaic_0001>
module attributes {stable_mosaic.version = 11 : i64} {
  func.func @_simple_rms_norm_kernel(%arg0: i32, %arg1: memref<8x256xf32, #tpu.memory_space<vmem>>, %arg2: memref<8x256xf32, #tpu.memory_space<vmem>>) attributes {dimension_semantics = [#tpu.dimension_semantics<parallel>], iteration_bounds = array<i64: 2>, scalar_prefetch = 0 : i64, scratch_operands = 0 : i64, tpu.core_type = #tpu.core_type<tc>, window_params = [{transform_indices = @transform_0, window_bounds = array<i64: 8, 256>}, {transform_indices = @transform_1, window_bounds = array<i64: 8, 256>}]} {
    %c0 = arith.constant 0 : index
    %c0_0 = arith.constant 0 : index
    %0 = vector.load %arg1[%c0, %c0_0] : memref<8x256xf32, #tpu.memory_space<vmem>>, vector<8x256xf32>
    %1 = arith.mulf %0, %0 : vector<8x256xf32>
    %cst = arith.constant dense<0.000000e+00> : vector<8xf32>
    %2 = vector.multi_reduction <add>, %1, %cst [1] : vector<8x256xf32> to vector<8xf32>
    %3 = vector.shape_cast %2 : vector<8xf32> to vector<8x1xf32>
    %cst_1 = arith.constant 1.000000e-24 : f32
    %4 = vector.broadcast %cst_1 : f32 to vector<8x1xf32>
    %5 = arith.maximumf %3, %4 : vector<8x1xf32>
    %6 = math.rsqrt %5 : vector<8x1xf32>
    %cst_2 = arith.constant 6.250000e-02 : f32
    %7 = vector.broadcast %cst_2 : f32 to vector<8x1xf32>
    %8 = arith.mulf %7, %6 : vector<8x1xf32>
    %9 = vector.broadcast %8 : vector<8x1xf32> to vector<8x256xf32>
    %10 = arith.mulf %0, %9 : vector<8x256xf32>
    %c0_3 = arith.constant 0 : index
    %c0_4 = arith.constant 0 : index
    %11 = vector.load %arg2[%c0_3, %c0_4] : memref<8x256xf32, #tpu.memory_space<vmem>>, vector<8x256xf32>
    tpu.vector_store %arg2[%c0_3, %c0_4], %10 {strides = array<i32>} : memref<8x256xf32, #tpu.memory_space<vmem>>, vector<8x256xf32>,
    return
  }
  func.func @transform_0(%arg0: i32) -> (i32, i32) {
    %c0_i32 = arith.constant 0 : i32
    %c0_i32_0 = arith.constant 0 : i32
    return %arg0, %c0_i32 : i32, i32
  }
  func.func @transform_1(%arg0: i32) -> (i32, i32) {
    %c0_i32 = arith.constant 0 : i32
    %c0_i32_0 = arith.constant 0 : i32
    return %arg0, %c0_i32 : i32, i32
  }
}

</mosaic_0001>

<bundles_post_ra>
// kernel: tpu_custom_call.1
= control target key start
LH: loop header
LB: loop body
LE: loop exit
PB: predicated region body
PF: predicated region fallthrough
CT: control target
= control target key end

     0   :  { %6 = vsyncpa [#allocation3], 0  ;;  %s544_s0 = inlined_call_operand.hbm [shape: f32[16,256], index: 0, kind: input, shape index: {}]   ;;  %s545_s1 = inlined_call_operand.hbm [shape: f32[16,256], index: 1, kind: output, shape index: {}]  }
   0x1   :  { %8 = vsyncpa [#allocation3 + $0x1], 0 }
   0x2   :  { %9 = vsyncpa [#allocation4], 0 }
   0x3   :  { %11 = vsyncpa [#allocation4 + $0x1], 0  ;;  %s417_s6 = smov 0   ;;  %s419_s7 = smov 0  }
   0x4   :  { %s421_s8 = smov 0   ;;  %s423_s9 = smov 0  }
   0x5 LB: > { %s438_s10 = sadd.s32 4294967295, %s405_s9   ;;  %s245_s11 = sadd.s32 4294967294, %s405_s9   ;;  %s405_s9 = sphi %s423_s9, %s555_s9   ;;  %s401_s8 = sphi %s421_s8, %s554_s8   ;;  %s397_s7 = sphi %s419_s7, %s553_s7   ;;  %s393_s6 = sphi %s417_s6, %s552_s6  }
   0x6   : > { %s442_s12 = sadd.s32 1, %s405_s9   ;;  %s24_s13 = sadd.s32 1, %s401_s8 }
   0x7   : > { %s21_s14 = ssub.s32 %s405_s9, %s442_s12  ;;  %p31_p0 = scmp.ne.s32.totalorder %s401_s8, %s397_s7 }
   0x8   : > { %p22_p1 = scmp.eq.s32.totalorder %s21_s14, 0  ;;  %p32_p2 = scmp.eq.s32.totalorder %s405_s9, 0 }
   0x9   : > { %p37_p3 = scmp.ne.s32.totalorder %s397_s7, %s393_s6  ;;  %p38_p4 = scmp.eq.s32.totalorder %s438_s10, 0 }
   0xa   : > { %s454_s15 = scalar_select %p22_p1, %s401_s8, %s24_s13  }
   0xb   : > { %p456_p5 = por %p32_p2, %p31_p0  ;;  %p460_p6 = por %p38_p4, %p37_p3 }
   0xc   : > { %p61_p7 = scmp.eq.s32.totalorder %s438_s10, 1  ;;  %p67_p8 = scmp.eq.s32.totalorder %s245_s11, 1 }
   0xd   : > { %p273_p10 = scmp.lt.s32.totalorder %s405_s9, 2  ;;  %s87_s20 = sand.u32 1, %s401_s8  }
   0xe   : > { %p467_p11 = por %p61_p7, %p31_p0  ;;  %p471_p12 = por %p67_p8, %p37_p3 }
   0xf   : > { %s259_s21 = sshll.u32 %s405_s9, 4  ;;  %s248_s22 = sshll.u32 %s87_s20, 4 }
  0x10   : > { %s96_s25 = scalar_lea.hbm %s544_s0, %s259_s21  ;;  %s91_s27 = scalar_lea.vmem [#allocation2], %s248_s22 }
  0x11   : > { %s98_s26 = sshll.u32 %s96_s25, 4  ;;  %s100_s28 = sshll.u32 %s91_s27, 4  ;;  %s99_s26 = int_to_ptr.hbm [resolvable:$true] %s98_s26  ;;  %s101_s28 = int_to_ptr.vmem [resolvable:$true] %s100_s28 }
  0x12   : > { %p482_p13 = pnand %p273_p10, %p456_p5  ;;  %p251_p0 = scmp.ge.s32.totalorder %s405_s9, 1 }
  0x13   : > { %p105_p1 = scmp.lt.s32.totalorder %s405_s9, 3  ;;  %s88_s30 = scalar_lea.sflag [#allocation3], %s87_s20 }
  0x14   : > { %s309_s2 = sshra.s32 %s99_s26, 4  ;;  %p313_p3 = pneg %p482_p13  ;;  %s310_s2 = int_to_ptr.hbm [resolvable:$true] %s309_s2 }
  0x15   : > { %s311_s3 = scalar_lea.hbm %s310_s2, 16  ;;  %s316_s11 = scalar_lea.hbm %s544_s0, 32 }
  0x16   : > { %p312_p2 = scmp.ne.s32.totalorder %s310_s2, %s311_s3  ;;  %p317_p5 = scmp.lt.s32.totalorder %s310_s2, %s544_s0 }
  0x17   : > { %p318_p8 = scmp.lt.s32.totalorder %s316_s11, %s311_s3 }
  0x18   : > { %p314_p4 = pnand %p313_p3, %p312_p2 }
  0x19   : > { %p319_p10 = por %p318_p8, %p317_p5 }
  0x1a   : > { %p315_p7 = pneg %p314_p4 }
  0x1c   : > { %p320_p9 = pnand %p319_p10, %p315_p7 }
  0x1e   : > { %323 = shalt.err (!%p320_p9)
}
  0x1f   : > { %268 = dma.hbm_to_vmem [thread:$0]  (!%p482_p13), %s99_s26, 256, %s101_s28, %s88_s30  }
  0x20   : > { %p106_p2 = pnand %p251_p0, %p105_p1 }
  0x21   : > { %s503_s16 = sand.u32 (!%p106_p2), 1, %s397_s7  }
  0x22   : > { %109 = sbr.rel (%p106_p2) target bundleno = 189 (0xbd), region = 24  ;;  %s252_s20 = sshll.u32 (!%p106_p2), %s503_s16, 4 }
  0x23   : > { %s112_s21 = scalar_lea.sflag (!%p106_p2), [#allocation3], %s503_s16  ;;  %s115_s22 = scalar_lea.vmem (!%p106_p2), [#allocation2], %s252_s20 }
  0x27   : > { %384 = dma.done.wait (%p460_p6), %s112_s21, 256  }
  0x28   : > { %386 = vsyncadd (%p460_p6), %s112_s21, 4294967040  ;;  %v135_v0 = vld [vmem:[%s115_s22] sm:$0xff]  ;;  %v136_v1 = vld [vmem:[%s115_s22 + $0x8] sm:$0xff]  ;;  %s260_s23 = sshll.u32 %s438_s10, 4  ;;  %s134_s26 = scalar_lea.vmem [#allocation5], %s252_s20 }
  0x29   : > { %v137_v2 = vmul.f32 %v135_v0, %v135_v0  ;;  %v138_v3 = vmul.f32 %v136_v1, %v136_v1  ;;  %s170_s25 = scalar_lea.hbm %s545_s1, %s260_s23  ;;  %s172_s27 = sshll.u32 %s134_s26, 4  ;;  %s173_s27 = int_to_ptr.vmem [resolvable:$true] %s172_s27 }
  0x2a   : > { %s174_s28 = sshll.u32 %s170_s25, 4  ;;  %s159_s10 = scalar_lea.sflag [#allocation4], %s503_s16  ;;  %s175_s28 = int_to_ptr.hbm [resolvable:$true] %s174_s28 }
  0x2b   : > { %v139_v4 = vadd.f32 %v138_v3, %v137_v2  ;;  %s353_s29 = sshra.s32 %s175_s28, 4  ;;  %s359_s4 = scalar_lea.hbm %s545_s1, 32  ;;  %s354_s29 = int_to_ptr.hbm [resolvable:$true] %s353_s29 }
  0x2c   : > { %s355_s30 = scalar_lea.hbm %s354_s29, 16  ;;  %p360_p0 = scmp.lt.s32.totalorder %s354_s29, %s545_s1 }
  0x2d   : > { %140 = vadd.xlane.f32.xlu0 %v139_v4  ;;  %p356_p6 = scmp.ne.s32.totalorder %s354_s29, %s355_s30  ;;  %p361_p1 = scmp.lt.s32.totalorder %s359_s4, %s355_s30 }
  0x2f   : > { %p357_p9 = pnand %p356_p6, %p467_p11  ;;  %p362_p3 = por %p361_p1, %p360_p0 }
  0x31   : > { %p358_p13 = pneg %p357_p9 }
  0x33   : > { %p363_p4 = pnand %p362_p3, %p358_p13 }
  0xa0   : > { %v141_v5 = vpop.xlane.xlu0 %140 }
  0xa1   : > { %v142_v6 = vmax.f32 %v141_v5, 1e-24 }
  0xa3   : > { %307 = vrsqrt.f32 %v142_v6  ;;  %vm149_vm1 = vweird.f32 %v142_v6 }
  0xa9   : > { %v308_v7 = vpop.eup %307 }
  0xaa   : > { %v144_v8 = vmul.f32 %v308_v7, %v142_v6  ;;  %vm150_vm0 = vweird.f32 %v308_v7 }
  0xab   : > { %vm151_vm2 = vmor %vm149_vm1, %vm150_vm0 }
  0xac   : > { %v145_v9 = vmul.f32 %v308_v7, %v144_v8 }
  0xae   : > { %v146_v10 = vmul.f32 0.5, %v145_v9 }
  0xb0   : > { %v147_v11 = vsub.f32 1.5, %v146_v10 }
  0xb2   : > { %v148_v12 = vmul.f32 %v308_v7, %v147_v11 }
  0xb4   : > { %v152_v13 = vsel %vm151_vm2, %v308_v7, %v148_v12 }
  0xb5   : > { %v153_v14 = vmul.f32 0.0625, %v152_v13 }
  0xb7   : > { %v154_v15 = vmul.f32 %v153_v14, %v135_v0  ;;  %v155_v16 = vmul.f32 %v153_v14, %v136_v1 }
  0xb9   : > { %156 = vst [vmem:[%s134_s26] sm:$0xff] %v154_v15 }
  0xba   : > { %157 = vst [vmem:[%s134_s26 + $0x8] sm:$0xff] %v155_v16 }
  0xbb   : > { %366 = shalt.err (!%p363_p4)
}
  0xbc   : > { %263 = dma.vmem_to_hbm [thread:$0]  (%p467_p11), %s173_s27, 256, %s175_s28, %s159_s10  }
  0xbd PF: > { %s186_s13 = sand.u32 1, %s393_s6   ;;  %p551_p7 = scmp.ge.s32.totalorder %s405_s9, 2 }
  0xbe   : > { %s187_s14 = scalar_lea.sflag [#allocation4], %s186_s13 }
  0xbf   : > { %p270_p5 = pnand %p551_p7, %p471_p12 }
  0xc1   : > { %p271_p8 = pneg %p270_p5 }
  0xc3   : > { %388 = dma.done.wait (%p271_p8), %s187_s14, 256  }
  0xc4   : > { %390 = vsyncadd (%p271_p8), %s187_s14, 4294967040  ;;  %p14_p10 = scmp.ge.s32.totalorder %s442_s12, 4   ;;  %s552_s6 = smov %s397_s7 }
  0xc5   : > { %s553_s7 = smov %s401_s8  ;;  %s554_s8 = smov %s454_s15 }
  0xc6   : > { %s555_s9 = smov %s442_s12  ;;  %16 = sbr.rel (!%p14_p10) target bundleno = 5 (0x5), region = 69 }
  0xcb   :  { %193 = vsyncpa [#allocation3], 1 }
  0xcc   :  { %195 = vsyncpa [#allocation3 + $0x1], 1 }
  0xcd   :  { %196 = vsyncpa [#allocation4], 1 }
  0xce   :  { %198 = vsyncpa [#allocation4 + $0x1], 1 }

</bundles_post_ra>
